<compile_context>
chip_gen: v5e
topology: v5e:2x2
jax: 0.10.0
libtpu: 0.0.40
codegen_flags: <defaults>
</compile_context>

<pallas_src>
import functools

import jax
import jax.numpy as jnp
from jax.experimental import pallas as pl
from jax.experimental.pallas import tpu as pltpu


def _round_up(x, m):
    return (x + m - 1) // m * m


def _pick_tile(padded_dim, cap, align=128):
    """Largest multiple of `align` <= cap that divides padded_dim (padded_dim % align == 0)."""
    if padded_dim <= cap:
        return padded_dim
    t = (cap // align) * align
    while t >= align:
        if padded_dim % t == 0:
            return t
        t -= align
    return align


def pack_decoder_weight(weight, bias=None, *, v_align=512, h_align=128, dtype=None):
    """One-time repack of the PyTorch-layout (V, H) decoder weight.

    Returns (weight_t, bias2d):
      weight_t : (Hp, Vp) = zero-padded, transposed weight (Hp = roundup(H,128),
                 Vp = roundup(V, v_align)) -- canonical RHS layout for the MXU.
      bias2d   : (1, Vp) zero-padded bias, or None.
    Doing this once at init removes a full weight read+write from every forward.
    """
    V, H = weight.shape
    Hp = _round_up(H, h_align)
    Vp = _round_up(V, v_align)
    if dtype is not None:
        weight = weight.astype(dtype)
    weight_t = jnp.pad(jnp.transpose(weight), ((0, Hp - H), (0, Vp - V)))
    bias2d = None
    if bias is not None:
        if dtype is not None:
            bias = bias.astype(dtype)
        bias2d = jnp.pad(bias, (0, Vp - V)).reshape(1, Vp)
    return weight_t, bias2d


def _decode_kernel(*refs, has_bias, multi_k):
    """x (tm,tk) @ w (tk,tn) [+ bias] -> o (tm,tn); f32 accumulation on the MXU."""
    acc_ref = refs[-1] if multi_k else None
    io_refs = refs[:-1] if multi_k else refs
    if has_bias:
        x_ref, w_ref, b_ref, o_ref = io_refs
    else:
        x_ref, w_ref, o_ref = io_refs
        b_ref = None

    prod = jnp.dot(x_ref[...], w_ref[...], preferred_element_type=jnp.float32)

    def _finish(acc):
        if b_ref is not None:
            acc = acc + b_ref[...].astype(jnp.float32)
        o_ref[...] = acc.astype(o_ref.dtype)

    if not multi_k:
        # Single K step: no scratch accumulator round trip at all.
        _finish(prod)
    else:
        k = pl.program_id(2)

        @pl.when(k == 0)
        def _():
            acc_ref[...] = prod          # assign, don't zero-init + '+='

        @pl.when(k > 0)
        def _():
            acc_ref[...] += prod

        @pl.when(k == pl.num_programs(2) - 1)
        def _():
            _finish(acc_ref[...])


def linear_decode(x_flat, weight_t, bias2d=None, *, out_dtype=None,
                  tm_cap=2048, tn_cap=512, tk_cap=2048,
                  vmem_budget_bytes=40 * 1024 * 1024):
    """Vocab projection: x_flat (M, H) @ weight_t (Hp, Vp) + bias (1, Vp).

    weight_t / bias2d come pre-padded + pre-transposed from pack_decoder_weight
    (done once at model init). Only the (small) activation block is padded here.
    Returns the (Mp, Vp) padded logits; the caller slices only if it must.
    """
    M, H = x_flat.shape
    Hp, Vp = weight_t.shape
    assert H <= Hp and Hp % 128 == 0 and Vp % 128 == 0, (H, Hp, Vp)
    out_dtype = out_dtype if out_dtype is not None else x_flat.dtype

    tk_e = _pick_tile(Hp, tk_cap)          # usually the whole hidden dim -> 1 K step
    tn_e = _pick_tile(Vp, tn_cap)
    nk = Hp // tk_e
    multi_k = nk > 1

    xb = jnp.dtype(x_flat.dtype).itemsize
    wb = jnp.dtype(weight_t.dtype).itemsize
    ob = jnp.dtype(out_dtype).itemsize

    # tm: cover as much of M as the VMEM budget allows so the weight is streamed
    # from HBM the minimum number of times (it dominates HBM traffic).
    tm_e = min(_round_up(M, 16), tm_cap)

    def working_set(tm):
        ws = 2 * (tm * tk_e * xb + tk_e * tn_e * wb + tm * tn_e * ob)
        if multi_k:
            ws += tm * tn_e * 4
        if bias2d is not None:
            ws += 2 * tn_e * wb
        return ws

    while tm_e > 256 and working_set(tm_e) > vmem_budget_bytes:
        tm_e = max(256, _round_up(tm_e // 2, 16))

    Mp = _round_up(M, tm_e)
    if (Mp, Hp) != (M, H):
        x_flat = jnp.pad(x_flat, ((0, Mp - M), (0, Hp - H)))

    nm, nn = Mp // tm_e, Vp // tn_e
    has_bias = bias2d is not None

    if multi_k:
        grid = (nm, nn, nk)
        x_spec = pl.BlockSpec((tm_e, tk_e), lambda i, j, k: (i, k))
        w_spec = pl.BlockSpec((tk_e, tn_e), lambda i, j, k: (k, j))
        b_spec = pl.BlockSpec((1, tn_e), lambda i, j, k: (0, j))
        o_spec = pl.BlockSpec((tm_e, tn_e), lambda i, j, k: (i, j))
        scratch = [pltpu.VMEM((tm_e, tn_e), jnp.float32)]
        semantics = ("parallel", "parallel", "arbitrary")
    else:
        grid = (nm, nn)
        x_spec = pl.BlockSpec((tm_e, tk_e), lambda i, j: (i, 0))
        w_spec = pl.BlockSpec((tk_e, tn_e), lambda i, j: (0, j))
        b_spec = pl.BlockSpec((1, tn_e), lambda i, j: (0, j))
        o_spec = pl.BlockSpec((tm_e, tn_e), lambda i, j: (i, j))
        scratch = []
        semantics = ("parallel", "parallel")

    cost = pl.CostEstimate(
        flops=2 * Mp * Hp * Vp,
        transcendentals=0,
        bytes_accessed=(Mp * Hp * xb           # activations, read once
                        + nm * Hp * Vp * wb    # weight, re-streamed per M tile
                        + Mp * Vp * ob         # logits writeback
                        + (Vp * wb if has_bias else 0)))

    kernel = functools.partial(_decode_kernel, has_bias=has_bias, multi_k=multi_k)
    in_specs = [x_spec, w_spec] + ([b_spec] if has_bias else [])
    args = (x_flat, weight_t) + ((bias2d,) if has_bias else ())

    # Explicit scoped-VMEM limit: >=32 MiB fixes v5e's 16 MiB default,
    # <=64 MiB respects a v7x TensorCore's physical VMEM.
    vmem_limit = int(min(max(working_set(tm_e) + (8 << 20), 32 << 20), 64 << 20))

    return pl.pallas_call(
        kernel,
        out_shape=jax.ShapeDtypeStruct((Mp, Vp), out_dtype),
        grid=grid,
        in_specs=in_specs,
        out_specs=o_spec,
        scratch_shapes=scratch,
        compiler_params=pltpu.CompilerParams(
            dimension_semantics=semantics,
            vmem_limit_bytes=vmem_limit),
        cost_estimate=cost,
    )(*args)


class LinearDecoderPallas:
    """JAX/Pallas equivalent of ulmfit.LinearDecoder."""
    init_range = 0.1

    def __init__(self, output_size, hidden_size, output_p, key,
                 tie_encoder=None, bias=True, param_dtype=None, out_dtype=None):
        self.output_size = output_size
        self.hidden_size = hidden_size
        self.output_p = output_p
        self.out_dtype = out_dtype
        if tie_encoder is not None:
            weight = tie_encoder.weight            # (V, H) shared encoder embedding
        else:
            # decoder.weight.data.uniform_(-0.1, 0.1)
            weight = jax.random.uniform(
                key, (output_size, hidden_size), jnp.float32,
                minval=-self.init_range, maxval=self.init_range)
        # decoder.bias.data.zero_()
        b = jnp.zeros((output_size,), jnp.float32) if bias else None
        self.weight = weight                       # original layout, for reference/tying
        self.bias = b
        # One-time pad + transpose (+ optional bf16 cast) of the persistent weight.
        # TODO(synk): if the tied encoder weight is updated during training, re-pack.
        self.weight_t, self.bias2d = pack_decoder_weight(weight, b, dtype=param_dtype)

    def __call__(self, inputs, *, training=False, dropout_key=None):
        raw_outputs, outputs = inputs
        output = outputs[-1]                       # (B, S, H)
        if training and self.output_p > 0.0:
            # RNNDropout: mask of shape (1, S, H), shared across dim 0, scaled by 1/(1-p).
            assert dropout_key is not None, "dropout_key required in training mode"
            keep = 1.0 - self.output_p
            m = jax.random.bernoulli(
                dropout_key, keep, (1,) + output.shape[1:]).astype(output.dtype)
            output = output * (m / keep)
        B, S, H = output.shape
        M = B * S
        x_flat = output.reshape(M, H)
        decoded = linear_decode(x_flat, self.weight_t, self.bias2d,
                                out_dtype=self.out_dtype)
        if decoded.shape != (M, self.output_size):
            # TODO(synk): for production vocab sizes keep the 128-padded logits and
            # mask padded columns in the downstream loss instead of this slice copy.
            decoded = decoded[:M, :self.output_size]
        return decoded, raw_outputs, outputs


if __name__ == "__main__":
    key = jax.random.PRNGKey(0)
    k_in, k_raw, k_param, k_in2, k_param2, k_x3, k_w3, k_b3 = jax.random.split(key, 8)

    # 1) Aligned shapes (H, V multiples of 128/512): no padding, no output slice.
    batch, seq, hidden, vocab = 2, 8, 128, 512
    outputs_last = jax.random.normal(k_in, (batch, seq, hidden), jnp.float32)
    raw_outputs = [jax.random.normal(k_raw, (batch, seq, hidden), jnp.float32)]
    outputs = [outputs_last]

    model = LinearDecoderPallas(output_size=vocab, hidden_size=hidden,
                                output_p=0.1, key=k_param, bias=True)
    decoded, raw_out, out = model((raw_outputs, outputs))
    decoded = jax.block_until_ready(decoded)

    ref = outputs_last.reshape(batch * seq, hidden) @ model.weight.T + model.bias
    assert decoded.shape == (batch * seq, vocab)
    assert jnp.allclose(decoded, ref, atol=1e-3, rtol=1e-3)

    # 2) Non-aligned shapes + bias=False: exercises zero-pad / slice / no-bias paths.
    h2, v2 = 33, 70
    x2 = jax.random.normal(k_in2, (2, 5, h2), jnp.float32)
    model2 = LinearDecoderPallas(output_size=v2, hidden_size=h2,
                                 output_p=0.0, key=k_param2, bias=False)
    dec2, _, _ = model2(([x2], [x2]))
    dec2 = jax.block_until_ready(dec2)
    ref2 = x2.reshape(2 * 5, h2) @ model2.weight.T
    assert dec2.shape == (2 * 5, v2)
    assert jnp.allclose(dec2, ref2, atol=1e-3, rtol=1e-3)

    # 3) Force the multi-K (scratch accumulator) path with a small tk cap.
    x3 = jax.random.normal(k_x3, (16, 256), jnp.float32)
    w3 = jax.random.uniform(k_w3, (384, 256), jnp.float32, minval=-0.1, maxval=0.1)
    b3 = 0.01 * jax.random.normal(k_b3, (384,), jnp.float32)
    wt3, b3p = pack_decoder_weight(w3, b3)
    out3 = linear_decode(x3, wt3, b3p, tk_cap=128)           # nk = 2
    out3 = jax.block_until_ready(out3)[:16, :384]
    ref3 = x3 @ w3.T + b3
    assert jnp.allclose(out3, ref3, atol=1e-3, rtol=1e-3)

    print("KERNEL_OK")
</pallas_src>

<mosaic_0001>
module attributes {stable_mosaic.version = 11 : i64} {
  func.func @_decode_kernel(%arg0: i32, %arg1: i32, %arg2: memref<16x128xf32, #tpu.memory_space<vmem>>, %arg3: memref<128x512xf32, #tpu.memory_space<vmem>>, %arg4: memref<1x512xf32, #tpu.memory_space<vmem>>, %arg5: memref<16x512xf32, #tpu.memory_space<vmem>>) attributes {dimension_semantics = [#tpu.dimension_semantics<parallel>, #tpu.dimension_semantics<parallel>], iteration_bounds = array<i64: 1, 1>, scalar_prefetch = 0 : i64, scratch_operands = 0 : i64, tpu.core_type = #tpu.core_type<tc>, window_params = [{transform_indices = @transform_0, window_bounds = array<i64: 16, 128>}, {transform_indices = @transform_1, window_bounds = array<i64: 128, 512>}, {transform_indices = @transform_2, window_bounds = array<i64: 1, 512>}, {transform_indices = @transform_3, window_bounds = array<i64: 16, 512>}]} {
    %c0 = arith.constant 0 : index
    %c0_0 = arith.constant 0 : index
    %0 = vector.load %arg2[%c0, %c0_0] : memref<16x128xf32, #tpu.memory_space<vmem>>, vector<16x128xf32>
    %c0_1 = arith.constant 0 : index
    %c0_2 = arith.constant 0 : index
    %1 = vector.load %arg3[%c0_1, %c0_2] : memref<128x512xf32, #tpu.memory_space<vmem>>, vector<128x512xf32>
    %cst = arith.constant dense<0.000000e+00> : vector<16x512xf32>
    %2 = tpu.matmul %0, %1, %cst {dimension_numbers = #tpu.dot_dimension_numbers<[1], [0], [0], [1], [0, 0, 1, 1], [], []>} : vector<16x128xf32>, vector<128x512xf32>, vector<16x512xf32> -> vector<16x512xf32>
    %c0_3 = arith.constant 0 : index
    %c0_4 = arith.constant 0 : index
    %3 = vector.load %arg4[%c0_3, %c0_4] : memref<1x512xf32, #tpu.memory_space<vmem>>, vector<1x512xf32>
    %4 = vector.broadcast %3 : vector<1x512xf32> to vector<16x512xf32>
    %5 = arith.addf %2, %4 : vector<16x512xf32>
    %c0_5 = arith.constant 0 : index
    %c0_6 = arith.constant 0 : index
    %6 = vector.load %arg5[%c0_5, %c0_6] : memref<16x512xf32, #tpu.memory_space<vmem>>, vector<16x512xf32>
    tpu.vector_store %arg5[%c0_5, %c0_6], %5 {strides = array<i32>} : memref<16x512xf32, #tpu.memory_space<vmem>>, vector<16x512xf32>,
    return
  }
  func.func @transform_0(%arg0: i32, %arg1: i32) -> (i32, i32) {
    %c0_i32 = arith.constant 0 : i32
    %c0_i32_0 = arith.constant 0 : i32
    return %arg0, %c0_i32 : i32, i32
  }
  func.func @transform_1(%arg0: i32, %arg1: i32) -> (i32, i32) {
    %c0_i32 = arith.constant 0 : i32
    %c0_i32_0 = arith.constant 0 : i32
    return %c0_i32, %arg1 : i32, i32
  }
  func.func @transform_2(%arg0: i32, %arg1: i32) -> (i32, i32) {
    %c0_i32 = arith.constant 0 : i32
    %c0_i32_0 = arith.constant 0 : i32
    return %c0_i32, %arg1 : i32, i32
  }
  func.func @transform_3(%arg0: i32, %arg1: i32) -> (i32, i32) {
    %c0_i32 = arith.constant 0 : i32
    return %arg0, %arg1 : i32, i32
  }
}

</mosaic_0001>

<bundles_post_ra>
// kernel: tpu_custom_call.1
= control target key start
LH: loop header
LB: loop body
LE: loop exit
PB: predicated region body
PF: predicated region fallthrough
CT: control target
= control target key end

     0   :  { %8 = vsyncpa [#allocation3], 0  ;;  %s412_s0 = inlined_call_operand.hbm [shape: f32[16,128], index: 0, kind: input, shape index: {}]   ;;  %s413_s1 = inlined_call_operand.hbm [shape: f32[128,512], index: 1, kind: input, shape index: {}]   ;;  %s414_s2 = inlined_call_operand.hbm [shape: f32[1,512], index: 2, kind: input, shape index: {}]   ;;  %s415_s3 = inlined_call_operand.hbm [shape: f32[16,512], index: 3, kind: output, shape index: {}]  }
   0x1   :  { %9 = vsyncpa [#allocation6], 0  ;;  %s28_s14 = sshll.u32 %s413_s1, 4  ;;  %s29_s14 = int_to_ptr.hbm [resolvable:$true] %s28_s14 }
   0x2   :  { %10 = vsyncpa [#allocation4], 0  ;;  %s366_s15 = smov [#allocation5]   ;;  %s15_s19 = sshll.u32 %s412_s0, 4  ;;  %s16_s19 = int_to_ptr.hbm [resolvable:$true] %s15_s19 }
   0x3   :  { %s30_s16 = sshll.u32 %s366_s15, 4  ;;  %s367_s20 = smov 512   ;;  %s31_s16 = int_to_ptr.vmem [resolvable:$true] %s30_s16 }
   0x4   :  { %s368_s21 = smov 32   ;;  %s369_s22 = smov [#allocation2]  }
   0x5   :  { %36 = dma.hbm_to_vmem [thread:$0]  %s29_s14, 8192, %s31_s16, [#allocation6], %s367_s20, %s367_s20, %s368_s21  }
   0x6   :  { %s17_s23 = sshll.u32 %s369_s22, 4  ;;  %s370_s1 = smov 128   ;;  %s18_s23 = int_to_ptr.vmem [resolvable:$true] %s17_s23 }
   0x7   :  { %s371_s24 = smov 8   ;;  %s42_s27 = sshll.u32 %s414_s2, 4  ;;  %s43_s27 = int_to_ptr.hbm [resolvable:$true] %s42_s27 }
   0x8   :  { %23 = dma.hbm_to_vmem [thread:$0]  %s16_s19, 256, %s18_s23, [#allocation3], %s370_s1, %s370_s1, %s371_s24  }
   0x9   :  { %s372_s28 = smov [#allocation7]  }
   0xa   :  { %s44_s0 = sshll.u32 %s372_s28, 4  ;;  %s45_s0 = int_to_ptr.vmem [resolvable:$true] %s44_s0 }
   0xb   :  { %47 = dma.hbm_to_vmem [thread:$0]  %s43_s27, 64, %s45_s0, [#allocation6]  }
   0xc   :  { %360 = dma.done.wait [#allocation3], 256  }
   0xd   :  { %361 = vsyncadd [#allocation3], 4294967040 }
   0xe   :  { %362 = dma.done.wait [#allocation6], 8256  }
   0xf   :  { %363 = vsyncadd [#allocation6], 4294959040  ;;  %v124_v0 = vld [vmem:[#allocation5 + $0x1f0] sm:$0xff]  ;;  %v125_v1 = vld [vmem:[#allocation5 + $0x1f8] sm:$0xff]  ;;  %s373_s2 = smov [#allocation8]   ;;  %s242_s5 = sshll.u32 %s415_s3, 4  ;;  %s243_s5 = int_to_ptr.hbm [resolvable:$true] %s242_s5 }
  0x10   :  { %v120_v2 = vld [vmem:[#allocation5 + $0x1d0] sm:$0xff]  ;;  %182 = vmatpush.msra.mxu2 %v124_v0  ;;  %205 = vmatpush.msra.mxu3 %v125_v1  ;;  %v121_v3 = vld [vmem:[#allocation5 + $0x1d8] sm:$0xff]  ;;  %v122_v6 = vld [vmem:[#allocation5 + $0x1e0] sm:$0xff]  ;;  %s240_s29 = sshll.u32 %s373_s2, 4  ;;  %s241_s29 = int_to_ptr.vmem [resolvable:$true] %s240_s29 }
  0x11   :  { %v116_v4 = vld [vmem:[#allocation5 + $0x1b0] sm:$0xff]  ;;  %v117_v5 = vld [vmem:[#allocation5 + $0x1b8] sm:$0xff]  ;;  %v123_v7 = vld [vmem:[#allocation5 + $0x1e8] sm:$0xff]  ;;  %136 = vmatpush.msra.mxu0 %v122_v6 }
  0x12   :  { %183 = vmatpush.msra.mxu2 %v120_v2  ;;  %206 = vmatpush.msra.mxu3 %v121_v3  ;;  %v118_v8 = vld [vmem:[#allocation5 + $0x1c0] sm:$0xff]  ;;  %v119_v9 = vld [vmem:[#allocation5 + $0x1c8] sm:$0xff]  ;;  %v112_v10 = vld [vmem:[#allocation5 + $0x190] sm:$0xff] }
  0x13   :  { %159 = vmatpush.msra.mxu1 %v123_v7  ;;  %v113_v11 = vld [vmem:[#allocation5 + $0x198] sm:$0xff]  ;;  %v114_v12 = vld [vmem:[#allocation5 + $0x1a0] sm:$0xff]  ;;  %v115_v13 = vld [vmem:[#allocation5 + $0x1a8] sm:$0xff]  ;;  %137 = vmatpush.msra.mxu0 %v118_v8 }
  0x14   :  { %184 = vmatpush.msra.mxu2 %v116_v4  ;;  %207 = vmatpush.msra.mxu3 %v117_v5  ;;  %v108_v14 = vld [vmem:[#allocation5 + $0x170] sm:$0xff]  ;;  %v109_v15 = vld [vmem:[#allocation5 + $0x178] sm:$0xff]  ;;  %v110_v16 = vld [vmem:[#allocation5 + $0x180] sm:$0xff] }
  0x15   :  { %160 = vmatpush.msra.mxu1 %v119_v9  ;;  %v111_v17 = vld [vmem:[#allocation5 + $0x188] sm:$0xff]  ;;  %138 = vmatpush.msra.mxu0 %v114_v12  ;;  %v104_v18 = vld [vmem:[#allocation5 + $0x150] sm:$0xff]  ;;  %v105_v19 = vld [vmem:[#allocation5 + $0x158] sm:$0xff] }
  0x16   :  { %185 = vmatpush.msra.mxu2 %v112_v10  ;;  %208 = vmatpush.msra.mxu3 %v113_v11  ;;  %v106_v20 = vld [vmem:[#allocation5 + $0x160] sm:$0xff]  ;;  %v107_v21 = vld [vmem:[#allocation5 + $0x168] sm:$0xff]  ;;  %v100_v22 = vld [vmem:[#allocation5 + $0x130] sm:$0xff] }
  0x17   :  { %161 = vmatpush.msra.mxu1 %v115_v13  ;;  %139 = vmatpush.msra.mxu0 %v110_v16  ;;  %v101_v23 = vld [vmem:[#allocation5 + $0x138] sm:$0xff]  ;;  %v102_v24 = vld [vmem:[#allocation5 + $0x140] sm:$0xff]  ;;  %v103_v25 = vld [vmem:[#allocation5 + $0x148] sm:$0xff] }
  0x18   :  { %186 = vmatpush.msra.mxu2 %v108_v14  ;;  %209 = vmatpush.msra.mxu3 %v109_v15  ;;  %v96_v26 = vld [vmem:[#allocation5 + $0x110] sm:$0xff]  ;;  %v97_v27 = vld [vmem:[#allocation5 + $0x118] sm:$0xff]  ;;  %v98_v28 = vld [vmem:[#allocation5 + $0x120] sm:$0xff] }
  0x19   :  { %162 = vmatpush.msra.mxu1 %v111_v17  ;;  %140 = vmatpush.msra.mxu0 %v106_v20  ;;  %v99_v29 = vld [vmem:[#allocation5 + $0x128] sm:$0xff]  ;;  %v92_v30 = vld [vmem:[#allocation5 + $0xf0] sm:$0xff]  ;;  %v93_v31 = vld [vmem:[#allocation5 + $0xf8] sm:$0xff] }
  0x1a   :  { %187 = vmatpush.msra.mxu2 %v104_v18  ;;  %210 = vmatpush.msra.mxu3 %v105_v19  ;;  %v94_v32 = vld [vmem:[#allocation5 + $0x100] sm:$0xff]  ;;  %v95_v33 = vld [vmem:[#allocation5 + $0x108] sm:$0xff]  ;;  %v88_v34 = vld [vmem:[#allocation5 + $0xd0] sm:$0xff] }
  0x1b   :  { %163 = vmatpush.msra.mxu1 %v107_v21  ;;  %141 = vmatpush.msra.mxu0 %v102_v24  ;;  %v89_v35 = vld [vmem:[#allocation5 + $0xd8] sm:$0xff]  ;;  %v90_v36 = vld [vmem:[#allocation5 + $0xe0] sm:$0xff]  ;;  %v91_v37 = vld [vmem:[#allocation5 + $0xe8] sm:$0xff] }
  0x1c   :  { %188 = vmatpush.msra.mxu2 %v100_v22  ;;  %211 = vmatpush.msra.mxu3 %v101_v23  ;;  %v84_v38 = vld [vmem:[#allocation5 + $0xb0] sm:$0xff]  ;;  %v85_v39 = vld [vmem:[#allocation5 + $0xb8] sm:$0xff]  ;;  %v86_v40 = vld [vmem:[#allocation5 + $0xc0] sm:$0xff] }
  0x1d   :  { %164 = vmatpush.msra.mxu1 %v103_v25  ;;  %142 = vmatpush.msra.mxu0 %v98_v28  ;;  %v87_v41 = vld [vmem:[#allocation5 + $0xc8] sm:$0xff]  ;;  %v80_v42 = vld [vmem:[#allocation5 + $0x90] sm:$0xff]  ;;  %v81_v43 = vld [vmem:[#allocation5 + $0x98] sm:$0xff] }
  0x1e   :  { %189 = vmatpush.msra.mxu2 %v96_v26  ;;  %212 = vmatpush.msra.mxu3 %v97_v27  ;;  %v82_v44 = vld [vmem:[#allocation5 + $0xa0] sm:$0xff]  ;;  %v83_v45 = vld [vmem:[#allocation5 + $0xa8] sm:$0xff]  ;;  %v76_v46 = vld [vmem:[#allocation5 + $0x70] sm:$0xff] }
  0x1f   :  { %165 = vmatpush.msra.mxu1 %v99_v29  ;;  %143 = vmatpush.msra.mxu0 %v94_v32  ;;  %v77_v47 = vld [vmem:[#allocation5 + $0x78] sm:$0xff]  ;;  %v78_v48 = vld [vmem:[#allocation5 + $0x80] sm:$0xff]  ;;  %v79_v49 = vld [vmem:[#allocation5 + $0x88] sm:$0xff] }
  0x20   :  { %190 = vmatpush.msra.mxu2 %v92_v30  ;;  %213 = vmatpush.msra.mxu3 %v93_v31  ;;  %v72_v50 = vld [vmem:[#allocation5 + $0x50] sm:$0xff]  ;;  %v73_v51 = vld [vmem:[#allocation5 + $0x58] sm:$0xff]  ;;  %v74_v52 = vld [vmem:[#allocation5 + $0x60] sm:$0xff] }
  0x21   :  { %166 = vmatpush.msra.mxu1 %v95_v33  ;;  %144 = vmatpush.msra.mxu0 %v90_v36  ;;  %v75_v53 = vld [vmem:[#allocation5 + $0x68] sm:$0xff]  ;;  %v68_v54 = vld [vmem:[#allocation5 + $0x30] sm:$0xff]  ;;  %v69_v55 = vld [vmem:[#allocation5 + $0x38] sm:$0xff] }
  0x22   :  { %191 = vmatpush.msra.mxu2 %v88_v34  ;;  %214 = vmatpush.msra.mxu3 %v89_v35  ;;  %v70_v56 = vld [vmem:[#allocation5 + $0x40] sm:$0xff]  ;;  %v71_v57 = vld [vmem:[#allocation5 + $0x48] sm:$0xff]  ;;  %v64_v58 = vld [vmem:[#allocation5 + $0x10] sm:$0xff] }
  0x23   :  { %167 = vmatpush.msra.mxu1 %v91_v37  ;;  %145 = vmatpush.msra.mxu0 %v86_v40  ;;  %v65_v59 = vld [vmem:[#allocation5 + $0x18] sm:$0xff]  ;;  %v60_v60 = vld [vmem:[#allocation2] sm:$0xff]  ;;  %v66_v61 = vld [vmem:[#allocation5 + $0x20] sm:$0xff] }
  0x24   :  { %192 = vmatpush.msra.mxu2 %v84_v38  ;;  %215 = vmatpush.msra.mxu3 %v85_v39  ;;  %v67_v62 = vld [vmem:[#allocation5 + $0x28] sm:$0xff]  ;;  %v62_v63 = vld [vmem:[#allocation5] sm:$0xff]  ;;  %v61_v1 = vld [vmem:[#allocation2 + $0x8] sm:$0xff] }
  0x25   :  { %168 = vmatpush.msra.mxu1 %v87_v41  ;;  %146 = vmatpush.msra.mxu0 %v82_v44  ;;  %v63_v0 = vld [vmem:[#allocation5 + $0x8] sm:$0xff]  ;;  %v126_v2 = vld [vmem:[#allocation7] sm:$0xf] }
  0x26   :  { %193 = vmatpush.msra.mxu2 %v80_v42  ;;  %216 = vmatpush.msra.mxu3 %v81_v43  ;;  %v128_v3 = vperm.slane %v126_v2, 0  ;;  %v129_v4 = vperm.slane %v126_v2, 1  ;;  %v130_v5 = vperm.slane %v126_v2, 2  ;;  %v131_v6 = vperm.slane %v126_v2, 3 }
  0x27   :  { %169 = vmatpush.msra.mxu1 %v83_v45  ;;  %147 = vmatpush.msra.mxu0 %v78_v48 }
  0x28   :  { %194 = vmatpush.msra.mxu2 %v76_v46  ;;  %217 = vmatpush.msra.mxu3 %v77_v47 }
  0x29   :  { %170 = vmatpush.msra.mxu1 %v79_v49  ;;  %148 = vmatpush.msra.mxu0 %v74_v52 }
  0x2a   :  { %195 = vmatpush.msra.mxu2 %v72_v50  ;;  %218 = vmatpush.msra.mxu3 %v73_v51 }
  0x2b   :  { %171 = vmatpush.msra.mxu1 %v75_v53  ;;  %149 = vmatpush.msra.mxu0 %v70_v56 }
  0x2c   :  { %196 = vmatpush.msra.mxu2 %v68_v54  ;;  %219 = vmatpush.msra.mxu3 %v69_v55 }
  0x2d   :  { %172 = vmatpush.msra.mxu1 %v71_v57  ;;  %150 = vmatpush.msra.mxu0 %v66_v61 }
  0x2e   :  { %197 = vmatpush.msra.mxu2 %v64_v58  ;;  %220 = vmatpush.msra.mxu3 %v65_v59 }
  0x2f   :  { %198 = vmatmul.f32.vlgmr.msra.gmra.mxu2 %v60_v60  ;;  %221 = vmatmul.f32.vlgmr.msra.gmra.mxu3 %v60_v60 }
  0x30   :  { %173 = vmatpush.msra.mxu1 %v67_v62  ;;  %151 = vmatpush.msra.mxu0 %v62_v63 }
  0x31   :  { %152 = vmatmul.f32.vlgmr.msra.gmra.mxu0 %v60_v60 }
  0x32   :  { %174 = vmatpush.msra.mxu1 %v63_v0 }
  0x33   :  { %175 = vmatmul.f32.vlgmr.msra.gmra.mxu1 %v60_v60 }
  0x37   :  { %201 = vmatmul.f32.gmra.mxu2 %v61_v1  ;;  %224 = vmatmul.f32.gmra.mxu3 %v61_v1 }
  0x39   :  { %155 = vmatmul.f32.gmra.mxu0 %v61_v1 }
  0x3b   :  { %178 = vmatmul.f32.gmra.mxu1 %v61_v1 }
  0xae   :  { %v153_v7 = vpop.f32.mrf.mxu0 }
  0xaf   :  { %v154_v9 = vadd.f32 %v153_v7, %v128_v3 }
  0xb0   :  { %v176_v8 = vpop.f32.mrf.mxu1 }
  0xb1   :  { %v177_v10 = vadd.f32 %v176_v8, %v129_v4  ;;  %228 = vst [vmem:[#allocation8] sm:$0xff] %v154_v9 }
  0xb2   :  { %v199_v11 = vpop.f32.mrf.mxu2  ;;  %v222_v12 = vpop.f32.mrf.mxu3 }
  0xb3   :  { %v200_v13 = vadd.f32 %v199_v11, %v130_v5  ;;  %v223_v14 = vadd.f32 %v222_v12, %v131_v6  ;;  %229 = vst [vmem:[#allocation8 + $0x8] sm:$0xff] %v177_v10 }
  0xb5   :  { %230 = vst [vmem:[#allocation8 + $0x10] sm:$0xff] %v200_v13 }
  0xb6   :  { %231 = vst [vmem:[#allocation8 + $0x18] sm:$0xff] %v223_v14  ;;  %v156_v15 = vpop.f32.mrf.mxu0 }
  0xb7   :  { %v157_v17 = vadd.f32 %v156_v15, %v128_v3 }
  0xb8   :  { %v179_v16 = vpop.f32.mrf.mxu1 }
  0xb9   :  { %v180_v18 = vadd.f32 %v179_v16, %v129_v4  ;;  %232 = vst [vmem:[#allocation8 + $0x20] sm:$0xff] %v157_v17 }
  0xba   :  { %v202_v19 = vpop.f32.mrf.mxu2  ;;  %v225_v20 = vpop.f32.mrf.mxu3 }
  0xbb   :  { %v203_v21 = vadd.f32 %v202_v19, %v130_v5  ;;  %v226_v22 = vadd.f32 %v225_v20, %v131_v6  ;;  %233 = vst [vmem:[#allocation8 + $0x28] sm:$0xff] %v180_v18 }
  0xbd   :  { %234 = vst [vmem:[#allocation8 + $0x30] sm:$0xff] %v203_v21 }
  0xbe   :  { %235 = vst [vmem:[#allocation8 + $0x38] sm:$0xff] %v226_v22 }
  0xbf   :  { %248 = dma.vmem_to_hbm [thread:$0]  %s241_s29, 1024, %s243_s5, [#allocation4], %s367_s20, %s367_s20, %s368_s21  }
  0xc0   :  { %364 = dma.done.wait [#allocation4], 1024  }
  0xc1   :  { %365 = vsyncadd [#allocation4], 4294966272 }
  0xc2   :  { %253 = vsyncpa [#allocation3], 1 }
  0xc3   :  { %254 = vsyncpa [#allocation6], 1 }
  0xc4   :  { %255 = vsyncpa [#allocation4], 1 }

</bundles_post_ra>
